<compile_context>
chip_gen: v7x
topology: tpu7x:2x2x1
jax: 0.10.0
libtpu: 0.0.40
codegen_flags: <defaults>
</compile_context>

<pallas_src>
import functools
import numpy as np

import jax
import jax.numpy as jnp
from jax.experimental import pallas as pl
from jax.experimental.pallas import tpu as pltpu

# ----------------------------- module constants -----------------------------
SIZE = 3
NUM_RADIAL = SIZE // 2 + 1            # 2  (torch.linspace(0, max_radius, steps=num_radial))
MAX_RADIUS = SIZE // 2                # 1
RADII = np.linspace(0.0, MAX_RADIUS, NUM_RADIAL).astype(np.float32)
GAMMA = 3.0                           # radial basis sharpness

# (multiplicity of l=0, l=1, l=2, l=3) per layer, as in SE3Net.__init__
FEATURES = [(1,), (2, 2, 2, 1), (4, 4, 4, 4), (6, 4, 4, 0), (64,)]

CPAD = 128                            # lane-padded conv/gate output width
KDIM = 64                             # sublane-trimmed contraction width (max real c_in = 64)


def rep_dim(mults):
    return sum(m * (2 * l + 1) for l, m in enumerate(mults))


def gating_structure(rs_out):
    """Channel layout: l=0 scalars first, then l>=1 capsules; gate scalars appended."""
    n_scalar = rs_out[0]
    c_out = rep_dim(rs_out)
    caps = []
    off = n_scalar
    for l in range(1, len(rs_out)):
        d = 2 * l + 1
        for _ in range(rs_out[l]):
            caps.append((off, d))
            off += d
    n_gates = len(caps)
    cover = np.zeros(c_out, np.int64)
    for st, d in caps:
        cover[st:st + d] += 1
    assert np.all(cover[:n_scalar] == 0) and np.all(cover[n_scalar:] == 1), \
        "gating structure does not cover capsule channels exactly once"
    return n_scalar, c_out, n_gates, caps


# ----------------------------- Pallas kernel ---------------------------------
def _se3net_kernel(x_ref, b_ref, w_ref, e_ref, sm_ref, vm_ref,
                   pool_ref, lw_ref, lb_ref, o_ref, feats_ref, *, n_radial):
    """One grid step = one gated point-conv layer; epilogue = pool + Linear."""
    i = pl.program_id(0)

    @pl.when(i == 0)
    def _init():
        feats_ref[...] = x_ref[...]                              # (RPAD, CPAD) f32

    # learned radial-basis point conv, reordered as
    #   conv = sum_s (B_s @ feats[:, :KDIM]) @ W_s    (bf16 MXU, f32 accumulation)
    feats64 = feats_ref[:, :KDIM].astype(jnp.bfloat16)           # (RPAD, 64)
    h = jnp.dot(b_ref[0], feats64, preferred_element_type=jnp.float32)
    conv = jnp.dot(h.astype(jnp.bfloat16), w_ref[0], preferred_element_type=jnp.float32)
    for s in range(1, n_radial):                                 # static unroll (S = 2)
        h = jnp.dot(b_ref[s], feats64, preferred_element_type=jnp.float32)
        conv = conv + jnp.dot(h.astype(jnp.bfloat16), w_ref[s],
                              preferred_element_type=jnp.float32)   # (RPAD, CPAD)

    # gated nonlinearity: relu on l=0 scalars, sigmoid-gate on capsule channels.
    # The lane-dense 0/1 expansion matmul broadcasts each sigmoid(gate) over its
    # capsule components.
    gexp = jnp.dot(jax.nn.sigmoid(conv).astype(jnp.bfloat16), e_ref[...],
                   preferred_element_type=jnp.float32)              # (RPAD, CPAD)
    y = jnp.where(sm_ref[...] > 0.5, jnp.maximum(conv, 0.0), conv * gexp)
    y = y * vm_ref[...]                                             # drop gates + pad lanes
    feats_ref[...] = y

    # epilogue: AvgSpacial (pooling matmul), Dropout = identity (eval), Linear head.
    @pl.when(i == pl.num_programs(0) - 1)
    def _epilogue():
        pooled = jnp.dot(pool_ref[...], y.astype(jnp.bfloat16),
                         preferred_element_type=jnp.float32)         # (RPAD, CPAD)
        logits = jnp.dot(pooled[:, :KDIM], lw_ref[...],
                         preferred_element_type=jnp.float32) + lb_ref[...]
        o_ref[...] = logits.astype(o_ref.dtype)


def _nbytes(shape, dtype):
    return int(np.prod(shape)) * jnp.dtype(dtype).itemsize


def se3net_pallas(x0, big_b, w_all, e_all, smask, vmask, pool, lin_w, lin_b):
    rpad, cpad = x0.shape
    n_layers, n_radial = w_all.shape[0], w_all.shape[1]

    # scoped VMEM sized to the real working set (residents + double-buffered layer blocks)
    resident = (_nbytes(x0.shape, x0.dtype) + _nbytes(big_b.shape, big_b.dtype)
                + _nbytes(pool.shape, pool.dtype) + _nbytes(lin_w.shape, lin_w.dtype)
                + _nbytes(lin_b.shape, lin_b.dtype)
                + 2 * _nbytes((rpad, cpad), jnp.float32))       # output block + feats scratch
    per_layer = (_nbytes(w_all.shape[1:], w_all.dtype) + _nbytes(e_all.shape[1:], e_all.dtype)
                 + _nbytes(smask.shape[1:], smask.dtype) + _nbytes(vmask.shape[1:], vmask.dtype))
    vmem_limit = int(min(64 * 2**20, max(4 * 2**20, 2 * (resident + 2 * per_layer))))

    kernel = functools.partial(_se3net_kernel, n_radial=n_radial)
    return pl.pallas_call(
        kernel,
        out_shape=jax.ShapeDtypeStruct((rpad, cpad), jnp.float32),
        grid_spec=pltpu.PrefetchScalarGridSpec(
            num_scalar_prefetch=0,
            grid=(n_layers,),
            in_specs=[
                pl.BlockSpec((rpad, cpad), lambda i: (0, 0)),                        # x0
                pl.BlockSpec((n_radial, rpad, rpad), lambda i: (0, 0, 0)),           # big_b
                pl.BlockSpec((None, n_radial, KDIM, cpad), lambda i: (i, 0, 0, 0)),  # w_all
                pl.BlockSpec((None, cpad, cpad), lambda i: (i, 0, 0)),               # e_all
                pl.BlockSpec((None, 1, cpad), lambda i: (i, 0, 0)),                  # smask
                pl.BlockSpec((None, 1, cpad), lambda i: (i, 0, 0)),                  # vmask
                pl.BlockSpec((rpad, rpad), lambda i: (0, 0)),                        # pool
                pl.BlockSpec((KDIM, cpad), lambda i: (0, 0)),                        # lin_w
                pl.BlockSpec((1, cpad), lambda i: (0, 0)),                           # lin_b
            ],
            out_specs=pl.BlockSpec((rpad, cpad), lambda i: (0, 0)),
            scratch_shapes=[pltpu.VMEM((rpad, cpad), jnp.float32)],
        ),
        compiler_params=pltpu.CompilerParams(
            dimension_semantics=("arbitrary",),       # layer axis is a sequential chain
            vmem_limit_bytes=vmem_limit,
        ),
    )(x0, big_b, w_all, e_all, smask, vmask, pool, lin_w, lin_b)


# ----------------------------- parameters ------------------------------------
def init_params(key, num_classes):
    n_layers = len(FEATURES) - 1
    s_rad = NUM_RADIAL
    w_all = np.zeros((n_layers, s_rad, KDIM, CPAD), np.float32)
    e_all = np.zeros((n_layers, CPAD, CPAD), np.float32)
    smask = np.zeros((n_layers, 1, CPAD), np.float32)
    vmask = np.zeros((n_layers, 1, CPAD), np.float32)

    for i in range(n_layers):
        c_in = rep_dim(FEATURES[i])
        n_scalar, c_out, n_gates, caps = gating_structure(FEATURES[i + 1])
        cc = c_out + n_gates                      # conv also produces the gate scalars
        assert c_in <= KDIM and cc <= CPAD
        key, sub = jax.random.split(key)
        std = 1.0 / np.sqrt(c_in * s_rad)
        w = np.asarray(std * jax.random.normal(sub, (s_rad, c_in, cc), jnp.float32))
        w_all[i, :, :c_in, :cc] = w
        for g, (st, d) in enumerate(caps):        # gate channel c_out+g gates channels [st, st+d)
            e_all[i, c_out + g, st:st + d] = 1.0
        smask[i, 0, :n_scalar] = 1.0
        vmask[i, 0, :c_out] = 1.0

    key, sub = jax.random.split(key)
    lin_w = np.zeros((KDIM, CPAD), np.float32)
    lin_w[:64, :num_classes] = np.asarray(
        (1.0 / np.sqrt(64.0)) * jax.random.normal(sub, (64, num_classes), jnp.float32))
    lin_b = np.zeros((1, CPAD), np.float32)

    # bf16 for the big matmul constants (0/1 entries of e_all are exact); masks and
    # the head stay f32.
    return dict(w=jnp.asarray(w_all, jnp.bfloat16), e=jnp.asarray(e_all, jnp.bfloat16),
                smask=jnp.asarray(smask), vmask=jnp.asarray(vmask),
                lin_w=jnp.asarray(lin_w), lin_b=jnp.asarray(lin_b))


# ----------------------------- forward ----------------------------------------
@functools.partial(jax.jit, static_argnames=("num_classes",))
def se3net_forward(params, x, difference_mat, *, num_classes):
    """x: (Z, N, C_in) channels-last; difference_mat: (Z, N, N, 3) as in PyTorch."""
    z, n, c_in0 = x.shape
    r = z * n
    # NOTE: pick Z so Z*N is a multiple of 128 (v5e) / 256 (v6e, v7x) to fill MXU rows.
    rpad = max(8, ((r + 7) // 8) * 8)
    s_rad = NUM_RADIAL

    # geometric glue, computed ONCE (layer-invariant, hoisted out of the kernel):
    # pairwise distances and the radial basis, block-diagonal over the batch.
    dist = jnp.sqrt(jnp.sum(difference_mat.astype(jnp.float32) ** 2, axis=-1))          # (Z,N,N)
    radii = jnp.asarray(RADII)
    basis = jnp.exp(-GAMMA * (dist[:, None, :, :] - radii[None, :, None, None]) ** 2)   # (Z,S,N,N)
    basis = jnp.transpose(basis, (1, 0, 2, 3))                                          # (S,Z,N,N)
    eye_z = jnp.eye(z, dtype=jnp.float32)
    big_b = (basis[:, :, :, None, :] * eye_z[None, :, None, :, None]).reshape(s_rad, r, r)
    big_b = jnp.pad(big_b, ((0, 0), (0, rpad - r), (0, rpad - r))).astype(jnp.bfloat16)

    # pack (Z, N) onto sublanes and pad channels to 128 lanes
    x0 = jnp.pad(x.reshape(r, c_in0).astype(jnp.float32),
                 ((0, rpad - r), (0, CPAD - c_in0)))                                    # (RPAD,CPAD)

    # AvgSpacial as a static pooling matrix (mean over the N points of each piece);
    # 1/N = 0.25 is exact in bf16 for the tetris N=4.
    pool = np.zeros((rpad, rpad), np.float32)
    pool[:z, :r] = np.kron(np.eye(z, dtype=np.float32),
                           np.full((1, n), 1.0 / n, np.float32))
    pool = jnp.asarray(pool, jnp.bfloat16)

    out = se3net_pallas(x0, big_b, params["w"], params["e"], params["smask"],
                        params["vmask"], pool, params["lin_w"], params["lin_b"])
    return out[:z, :num_classes]


# ----------------------------- demo ------------------------------------------
if __name__ == "__main__":
    key = jax.random.PRNGKey(0)
    Z, N, num_classes = 32, 4, 8                  # 32 tetris pieces x 4 points = 128 MXU rows
    k_pos, k_par = jax.random.split(key)

    pos = jax.random.normal(k_pos, (Z, N, 3), jnp.float32)
    difference_mat = pos[:, :, None, :] - pos[:, None, :, :]          # (Z, N, N, 3)
    x = jnp.ones((Z, N, rep_dim(FEATURES[0])), jnp.float32)           # one scalar per point

    params = init_params(k_par, num_classes)
    logits = se3net_forward(params, x, difference_mat, num_classes=num_classes)
    jax.block_until_ready(logits)

    assert logits.shape == (Z, num_classes), logits.shape
    assert bool(jnp.all(jnp.isfinite(logits)))
    print("KERNEL_OK")
</pallas_src>

<mosaic_0001>
module attributes {stable_mosaic.version = 11 : i64} {
  func.func @_se3net_kernel(%arg0: i32, %arg1: memref<128x128xf32, #tpu.memory_space<vmem>>, %arg2: memref<2x128x128xbf16, #tpu.memory_space<vmem>>, %arg3: memref<1x2x64x128xbf16, #tpu.memory_space<vmem>>, %arg4: memref<1x128x128xbf16, #tpu.memory_space<vmem>>, %arg5: memref<1x1x128xf32, #tpu.memory_space<vmem>>, %arg6: memref<1x1x128xf32, #tpu.memory_space<vmem>>, %arg7: memref<128x128xbf16, #tpu.memory_space<vmem>>, %arg8: memref<64x128xf32, #tpu.memory_space<vmem>>, %arg9: memref<1x128xf32, #tpu.memory_space<vmem>>, %arg10: memref<128x128xf32, #tpu.memory_space<vmem>>, %arg11: memref<128x128xf32, #tpu.memory_space<vmem>>) attributes {dimension_semantics = [#tpu.dimension_semantics<arbitrary>], iteration_bounds = array<i64: 4>, scalar_prefetch = 0 : i64, scratch_operands = 1 : i64, tpu.core_type = #tpu.core_type<tc>, window_params = [{pipeline_mode = #tpu.pipeline_mode<synchronous>, transform_indices = @transform_0, window_bounds = array<i64: 128, 128>}, {pipeline_mode = #tpu.pipeline_mode<synchronous>, transform_indices = @transform_1, window_bounds = array<i64: 2, 128, 128>}, {transform_indices = @transform_2, window_bounds = array<i64: 1, 2, 64, 128>}, {transform_indices = @transform_3, window_bounds = array<i64: 1, 128, 128>}, {transform_indices = @transform_4, window_bounds = array<i64: 1, 1, 128>}, {transform_indices = @transform_5, window_bounds = array<i64: 1, 1, 128>}, {pipeline_mode = #tpu.pipeline_mode<synchronous>, transform_indices = @transform_6, window_bounds = array<i64: 128, 128>}, {pipeline_mode = #tpu.pipeline_mode<synchronous>, transform_indices = @transform_7, window_bounds = array<i64: 64, 128>}, {pipeline_mode = #tpu.pipeline_mode<synchronous>, transform_indices = @transform_8, window_bounds = array<i64: 1, 128>}, {pipeline_mode = #tpu.pipeline_mode<synchronous>, transform_indices = @transform_9, window_bounds = array<i64: 128, 128>}]} {
    %c0_i32 = arith.constant 0 : i32
    %0 = arith.cmpi eq, %arg0, %c0_i32 : i32
    %1 = arith.extui %0 : i1 to i32
    %c0_i32_0 = arith.constant 0 : i32
    %2 = arith.cmpi ne, %1, %c0_i32_0 : i32
    scf.if %2 {
      %c0_34 = arith.constant 0 : index
      %c0_35 = arith.constant 0 : index
      %47 = vector.load %arg1[%c0_34, %c0_35] : memref<128x128xf32, #tpu.memory_space<vmem>>, vector<128x128xf32>
      %c0_36 = arith.constant 0 : index
      %c0_37 = arith.constant 0 : index
      %48 = vector.load %arg11[%c0_36, %c0_37] : memref<128x128xf32, #tpu.memory_space<vmem>>, vector<128x128xf32>
      tpu.vector_store %arg11[%c0_36, %c0_37], %47 {strides = array<i32>} : memref<128x128xf32, #tpu.memory_space<vmem>>, vector<128x128xf32>,
    } else {
    }
    %c0 = arith.constant 0 : index
    %c0_1 = arith.constant 0 : index
    %3 = vector.load %arg11[%c0, %c0_1] : memref<128x128xf32, #tpu.memory_space<vmem>>, vector<128x64xf32>
    %4 = arith.truncf %3 : vector<128x64xf32> to vector<128x64xbf16>
    %c0_2 = arith.constant 0 : index
    %c0_3 = arith.constant 0 : index
    %c0_4 = arith.constant 0 : index
    %5 = vector.load %arg2[%c0_2, %c0_3, %c0_4] : memref<2x128x128xbf16, #tpu.memory_space<vmem>>, vector<1x128x128xbf16>
    %6 = vector.shape_cast %5 : vector<1x128x128xbf16> to vector<128x128xbf16>
    %cst = arith.constant dense<0.000000e+00> : vector<128x64xf32>
    %7 = tpu.matmul %6, %4, %cst {dimension_numbers = #tpu.dot_dimension_numbers<[1], [0], [0], [1], [0, 0, 1, 1], [], []>} : vector<128x128xbf16>, vector<128x64xbf16>, vector<128x64xf32> -> vector<128x64xf32>
    %8 = arith.truncf %7 : vector<128x64xf32> to vector<128x64xbf16>
    %c0_5 = arith.constant 0 : index
    %c0_6 = arith.constant 0 : index
    %c0_7 = arith.constant 0 : index
    %c0_8 = arith.constant 0 : index
    %9 = vector.load %arg3[%c0_5, %c0_6, %c0_7, %c0_8] : memref<1x2x64x128xbf16, #tpu.memory_space<vmem>>, vector<1x1x64x128xbf16>
    %10 = vector.shape_cast %9 : vector<1x1x64x128xbf16> to vector<64x128xbf16>
    %cst_9 = arith.constant dense<0.000000e+00> : vector<128x128xf32>
    %11 = tpu.matmul %8, %10, %cst_9 {dimension_numbers = #tpu.dot_dimension_numbers<[1], [0], [0], [1], [0, 0, 1, 1], [], []>} : vector<128x64xbf16>, vector<64x128xbf16>, vector<128x128xf32> -> vector<128x128xf32>
    %c1 = arith.constant 1 : index
    %c0_10 = arith.constant 0 : index
    %c0_11 = arith.constant 0 : index
    %12 = vector.load %arg2[%c1, %c0_10, %c0_11] : memref<2x128x128xbf16, #tpu.memory_space<vmem>>, vector<1x128x128xbf16>
    %13 = vector.shape_cast %12 : vector<1x128x128xbf16> to vector<128x128xbf16>
    %cst_12 = arith.constant dense<0.000000e+00> : vector<128x64xf32>
    %14 = tpu.matmul %13, %4, %cst_12 {dimension_numbers = #tpu.dot_dimension_numbers<[1], [0], [0], [1], [0, 0, 1, 1], [], []>} : vector<128x128xbf16>, vector<128x64xbf16>, vector<128x64xf32> -> vector<128x64xf32>
    %15 = arith.truncf %14 : vector<128x64xf32> to vector<128x64xbf16>
    %c0_13 = arith.constant 0 : index
    %c1_14 = arith.constant 1 : index
    %c0_15 = arith.constant 0 : index
    %c0_16 = arith.constant 0 : index
    %16 = vector.load %arg3[%c0_13, %c1_14, %c0_15, %c0_16] : memref<1x2x64x128xbf16, #tpu.memory_space<vmem>>, vector<1x1x64x128xbf16>
    %17 = vector.shape_cast %16 : vector<1x1x64x128xbf16> to vector<64x128xbf16>
    %cst_17 = arith.constant dense<0.000000e+00> : vector<128x128xf32>
    %18 = tpu.matmul %15, %17, %cst_17 {dimension_numbers = #tpu.dot_dimension_numbers<[1], [0], [0], [1], [0, 0, 1, 1], [], []>} : vector<128x64xbf16>, vector<64x128xbf16>, vector<128x128xf32> -> vector<128x128xf32>
    %19 = arith.addf %11, %18 : vector<128x128xf32>
    %20 = arith.negf %19 : vector<128x128xf32>
    %21 = math.exp %20 : vector<128x128xf32>
    %cst_18 = arith.constant 1.000000e+00 : f32
    %22 = vector.broadcast %cst_18 : f32 to vector<128x128xf32>
    %23 = arith.addf %22, %21 : vector<128x128xf32>
    %24 = arith.divf %22, %23 : vector<128x128xf32>
    %25 = arith.truncf %24 : vector<128x128xf32> to vector<128x128xbf16>
    %c0_19 = arith.constant 0 : index
    %c0_20 = arith.constant 0 : index
    %c0_21 = arith.constant 0 : index
    %26 = vector.load %arg4[%c0_19, %c0_20, %c0_21] : memref<1x128x128xbf16, #tpu.memory_space<vmem>>, vector<1x128x128xbf16>
    %27 = vector.shape_cast %26 : vector<1x128x128xbf16> to vector<128x128xbf16>
    %cst_22 = arith.constant dense<0.000000e+00> : vector<128x128xf32>
    %28 = tpu.matmul %25, %27, %cst_22 {dimension_numbers = #tpu.dot_dimension_numbers<[1], [0], [0], [1], [0, 0, 1, 1], [], []>} : vector<128x128xbf16>, vector<128x128xbf16>, vector<128x128xf32> -> vector<128x128xf32>
    %c0_23 = arith.constant 0 : index
    %c0_24 = arith.constant 0 : index
    %c0_25 = arith.constant 0 : index
    %29 = vector.load %arg5[%c0_23, %c0_24, %c0_25] : memref<1x1x128xf32, #tpu.memory_space<vmem>>, vector<1x1x128xf32>
    %30 = vector.shape_cast %29 : vector<1x1x128xf32> to vector<1x128xf32>
    %cst_26 = arith.constant 5.000000e-01 : f32
    %31 = vector.broadcast %cst_26 : f32 to vector<1x128xf32>
    %32 = arith.cmpf ogt, %30, %31 : vector<1x128xf32>
    %cst_27 = arith.constant 0.000000e+00 : f32
    %33 = vector.broadcast %cst_27 : f32 to vector<128x128xf32>
    %34 = arith.maximumf %19, %33 : vector<128x128xf32>
    %35 = arith.mulf %19, %28 : vector<128x128xf32>
    %36 = vector.shape_cast %32 : vector<1x128xi1> to vector<1x128xi1>
    %37 = vector.broadcast %36 : vector<1x128xi1> to vector<128x128xi1>
    %38 = arith.select %37, %34, %35 : vector<128x128xi1>, vector<128x128xf32>
    %c0_28 = arith.constant 0 : index
    %c0_29 = arith.constant 0 : index
    %c0_30 = arith.constant 0 : index
    %39 = vector.load %arg6[%c0_28, %c0_29, %c0_30] : memref<1x1x128xf32, #tpu.memory_space<vmem>>, vector<1x1x128xf32>
    %40 = vector.shape_cast %39 : vector<1x1x128xf32> to vector<1x128xf32>
    %41 = vector.broadcast %40 : vector<1x128xf32> to vector<128x128xf32>
    %42 = arith.mulf %38, %41 : vector<128x128xf32>
    %c0_31 = arith.constant 0 : index
    %c0_32 = arith.constant 0 : index
    %43 = vector.load %arg11[%c0_31, %c0_32] : memref<128x128xf32, #tpu.memory_space<vmem>>, vector<128x128xf32>
    tpu.vector_store %arg11[%c0_31, %c0_32], %42 {strides = array<i32>} : memref<128x128xf32, #tpu.memory_space<vmem>>, vector<128x128xf32>,
    %c3_i32 = arith.constant 3 : i32
    %44 = arith.cmpi eq, %arg0, %c3_i32 : i32
    %45 = arith.extui %44 : i1 to i32
    %c0_i32_33 = arith.constant 0 : i32
    %46 = arith.cmpi ne, %45, %c0_i32_33 : i32
    scf.if %46 {
      %c0_34 = arith.constant 0 : index
      %c0_35 = arith.constant 0 : index
      %47 = vector.load %arg7[%c0_34, %c0_35] : memref<128x128xbf16, #tpu.memory_space<vmem>>, vector<128x128xbf16>
      %48 = arith.truncf %42 : vector<128x128xf32> to vector<128x128xbf16>
      %cst_36 = arith.constant dense<0.000000e+00> : vector<128x128xf32>
      %49 = tpu.matmul %47, %48, %cst_36 {dimension_numbers = #tpu.dot_dimension_numbers<[1], [0], [0], [1], [0, 0, 1, 1], [], []>} : vector<128x128xbf16>, vector<128x128xbf16>, vector<128x128xf32> -> vector<128x128xf32>
      %50 = vector.extract_strided_slice %49 {offsets = [0, 0], sizes = [128, 64], strides = [1, 1]} : vector<128x128xf32> to vector<128x64xf32>
      %c0_37 = arith.constant 0 : index
      %c0_38 = arith.constant 0 : index
      %51 = vector.load %arg8[%c0_37, %c0_38] : memref<64x128xf32, #tpu.memory_space<vmem>>, vector<64x128xf32>
      %cst_39 = arith.constant dense<0.000000e+00> : vector<128x128xf32>
      %52 = tpu.matmul %50, %51, %cst_39 {dimension_numbers = #tpu.dot_dimension_numbers<[1], [0], [0], [1], [0, 0, 1, 1], [], []>} : vector<128x64xf32>, vector<64x128xf32>, vector<128x128xf32> -> vector<128x128xf32>
      %c0_40 = arith.constant 0 : index
      %c0_41 = arith.constant 0 : index
      %53 = vector.load %arg9[%c0_40, %c0_41] : memref<1x128xf32, #tpu.memory_space<vmem>>, vector<1x128xf32>
      %54 = vector.broadcast %53 : vector<1x128xf32> to vector<128x128xf32>
      %55 = arith.addf %52, %54 : vector<128x128xf32>
      %c0_42 = arith.constant 0 : index
      %c0_43 = arith.constant 0 : index
      %56 = vector.load %arg10[%c0_42, %c0_43] : memref<128x128xf32, #tpu.memory_space<vmem>>, vector<128x128xf32>
      tpu.vector_store %arg10[%c0_42, %c0_43], %55 {strides = array<i32>} : memref<128x128xf32, #tpu.memory_space<vmem>>, vector<128x128xf32>,
    } else {
    }
    return
  }
  func.func @transform_0(%arg0: i32) -> (i32, i32) {
    %c0_i32 = arith.constant 0 : i32
    %c0_i32_0 = arith.constant 0 : i32
    %c0_i32_1 = arith.constant 0 : i32
    return %c0_i32, %c0_i32_0 : i32, i32
  }
  func.func @transform_1(%arg0: i32) -> (i32, i32, i32) {
    %c0_i32 = arith.constant 0 : i32
    %c0_i32_0 = arith.constant 0 : i32
    %c0_i32_1 = arith.constant 0 : i32
    %c0_i32_2 = arith.constant 0 : i32
    return %c0_i32, %c0_i32_0, %c0_i32_1 : i32, i32, i32
  }
  func.func @transform_2(%arg0: i32) -> (i32, i32, i32, i32) {
    %c0_i32 = arith.constant 0 : i32
    %c0_i32_0 = arith.constant 0 : i32
    %c0_i32_1 = arith.constant 0 : i32
    %c0_i32_2 = arith.constant 0 : i32
    return %arg0, %c0_i32, %c0_i32_0, %c0_i32_1 : i32, i32, i32, i32
  }
  func.func @transform_3(%arg0: i32) -> (i32, i32, i32) {
    %c0_i32 = arith.constant 0 : i32
    %c0_i32_0 = arith.constant 0 : i32
    %c0_i32_1 = arith.constant 0 : i32
    return %arg0, %c0_i32, %c0_i32_0 : i32, i32, i32
  }
  func.func @transform_4(%arg0: i32) -> (i32, i32, i32) {
    %c0_i32 = arith.constant 0 : i32
    %c0_i32_0 = arith.constant 0 : i32
    %c0_i32_1 = arith.constant 0 : i32
    return %arg0, %c0_i32, %c0_i32_0 : i32, i32, i32
  }
  func.func @transform_5(%arg0: i32) -> (i32, i32, i32) {
    %c0_i32 = arith.constant 0 : i32
    %c0_i32_0 = arith.constant 0 : i32
    %c0_i32_1 = arith.constant 0 : i32
    return %arg0, %c0_i32, %c0_i32_0 : i32, i32, i32
  }
  func.func @transform_6(%arg0: i32) -> (i32, i32) {
    %c0_i32 = arith.constant 0 : i32
    %c0_i32_0 = arith.constant 0 : i32
    %c0_i32_1 = arith.constant 0 : i32
    return %c0_i32, %c0_i32_0 : i32, i32
  }
  func.func @transform_7(%arg0: i32) -> (i32, i32) {
    %c0_i32 = arith.constant 0 : i32
    %c0_i32_0 = arith.constant 0 : i32
    %c0_i32_1 = arith.constant 0 : i32
    return %c0_i32, %c0_i32_0 : i32, i32
  }
  func.func @transform_8(%arg0: i32) -> (i32, i32) {
    %c0_i32 = arith.constant 0 : i32
    %c0_i32_0 = arith.constant 0 : i32
    %c0_i32_1 = arith.constant 0 : i32
    return %c0_i32, %c0_i32_0 : i32, i32
  }
  func.func @transform_9(%arg0: i32) -> (i32, i32) {
    %c0_i32 = arith.constant 0 : i32
    %c0_i32_0 = arith.constant 0 : i32
    %c0_i32_1 = arith.constant 0 : i32
    return %c0_i32, %c0_i32_0 : i32, i32
  }
}

</mosaic_0001>

<bundles_post_ra>
// kernel: se3net_forward.1
= control target key start
LH: loop header
LB: loop body
LE: loop exit
PB: predicated region body
PF: predicated region fallthrough
CT: control target
= control target key end

     0   :  { %s2549_s30 = smov 0   ;;  %s3011_s0 = inlined_call_operand.vmem [shape: f32[128,128], index: 0, kind: input, shape index: {}]   ;;  %s3012_s1 = inlined_call_operand.vmem [shape: bf16[2,128,128], index: 1, kind: input, shape index: {}]   ;;  %s3013_s2 = inlined_call_operand.vmem [shape: bf16[4,2,64,128], index: 2, kind: input, shape index: {}]   ;;  %s3014_s3 = inlined_call_operand.vmem [shape: bf16[4,128,128], index: 3, kind: input, shape index: {}]   ;;  %s3015_s4 = inlined_call_operand.vmem [shape: f32[4,1,128], index: 4, kind: input, shape index: {}]   ;;  %s3016_s5 = inlined_call_operand.vmem [shape: f32[4,1,128], index: 5, kind: input, shape index: {}]   ;;  %s3017_s6 = inlined_call_operand.vmem [shape: bf16[128,128], index: 6, kind: input, shape index: {}]   ;;  %s3018_s7 = inlined_call_operand.vmem [shape: f32[64,128], index: 7, kind: input, shape index: {}]   ;;  %s3019_s8 = inlined_call_operand.vmem [shape: f32[1,128], index: 8, kind: input, shape index: {}]   ;;  %s3020_s9 = inlined_call_operand.vmem [shape: f32[128,128], index: 9, kind: output, shape index: {}]  }
   0x1 LB: > { %s2555_s10 = sadd.s32 4294967295, %s2496_s30   ;;  %p1892_p0 = scmp.ge.s32.totalorder %s2496_s30, 1  ;;  %s2496_s30 = sphi %s2549_s30, %s19_s30  }
   0x2   : > { %p308_p1 = scmp.lt.s32.totalorder %s2496_s30, 5 }
   0x4   : > { %p309_p2 = pnand %p1892_p0, %p308_p1 }
   0x5   : > { %p350_p3 = scmp.lt.s32.totalorder (!%p309_p2), %s2555_s10, 3  ;;  %p1897_p4 = scmp.ne.s32.totalorder (!%p309_p2), %s2555_s10, 0 }
   0x6   : > { %312 = sbr.rel (%p309_p2) target bundleno = 1286 (0x506), region = 56 }
   0xd   : > { %s2561_s11 = scalar_select %p350_p3, %s2555_s10, 3 }
   0xe   : > { %370 = sbr.rel (%p1897_p4) target bundleno = 23 (0x17), region = 60  ;;  %v371_v0 = vld [vmem:[%s3011_s0] sm:$0xff] (!%p1897_p4)  ;;  %v372_v1 = vld [vmem:[%s3011_s0 + $0x8] sm:$0xff] (!%p1897_p4)  ;;  %v373_v2 = vld [vmem:[%s3011_s0 + $0x10] sm:$0xff] (!%p1897_p4) }
   0xf   : > { %s2015_s12 = sshll.u32 %s2561_s11, 6  ;;  %s362_s15 = scalar_lea.vmem %s3015_s4, %s2561_s11  ;;  %387 = vst [vmem:[#allocation2] sm:$0xff] (!%p1897_p4), %v371_v0  ;;  %388 = vst [vmem:[#allocation2 + $0x8] sm:$0xff] (!%p1897_p4), %v372_v1  ;;  %v374_v3 = vld [vmem:[%s3011_s0 + $0x18] sm:$0xff] (!%p1897_p4)  ;;  %v375_v4 = vld [vmem:[%s3011_s0 + $0x20] sm:$0xff] (!%p1897_p4) }
  0x10   : > { %s2571_s18 = scalar_lea.vmem %s3013_s2, %s2015_s12  ;;  %s2576_s21 = scalar_lea.vmem %s3014_s3, %s2015_s12  ;;  %389 = vst [vmem:[#allocation2 + $0x10] sm:$0xff] (!%p1897_p4), %v373_v2  ;;  %v376_v5 = vld [vmem:[%s3011_s0 + $0x28] sm:$0xff] (!%p1897_p4)  ;;  %390 = vst [vmem:[#allocation2 + $0x18] sm:$0xff] (!%p1897_p4), %v374_v3  ;;  %v377_v6 = vld [vmem:[%s3011_s0 + $0x30] sm:$0xff] (!%p1897_p4) }
  0x11   : > { %s365_s24 = scalar_lea.vmem %s3016_s5, %s2561_s11  ;;  %391 = vst [vmem:[#allocation2 + $0x20] sm:$0xff] (!%p1897_p4), %v375_v4  ;;  %392 = vst [vmem:[#allocation2 + $0x28] sm:$0xff] (!%p1897_p4), %v376_v5  ;;  %v378_v7 = vld [vmem:[%s3011_s0 + $0x38] sm:$0xff] (!%p1897_p4)  ;;  %v379_v8 = vld [vmem:[%s3011_s0 + $0x40] sm:$0xff] (!%p1897_p4) }
  0x12   : > { %393 = vst [vmem:[#allocation2 + $0x30] sm:$0xff] (!%p1897_p4), %v377_v6  ;;  %394 = vst [vmem:[#allocation2 + $0x38] sm:$0xff] (!%p1897_p4), %v378_v7  ;;  %v380_v9 = vld [vmem:[%s3011_s0 + $0x48] sm:$0xff] (!%p1897_p4)  ;;  %v381_v10 = vld [vmem:[%s3011_s0 + $0x50] sm:$0xff] (!%p1897_p4) }
  0x13   : > { %395 = vst [vmem:[#allocation2 + $0x40] sm:$0xff] (!%p1897_p4), %v379_v8  ;;  %v382_v11 = vld [vmem:[%s3011_s0 + $0x58] sm:$0xff] (!%p1897_p4)  ;;  %396 = vst [vmem:[#allocation2 + $0x48] sm:$0xff] (!%p1897_p4), %v380_v9  ;;  %v383_v12 = vld [vmem:[%s3011_s0 + $0x60] sm:$0xff] (!%p1897_p4) }
  0x14   : > { %397 = vst [vmem:[#allocation2 + $0x50] sm:$0xff] (!%p1897_p4), %v381_v10  ;;  %398 = vst [vmem:[#allocation2 + $0x58] sm:$0xff] (!%p1897_p4), %v382_v11  ;;  %v384_v13 = vld [vmem:[%s3011_s0 + $0x68] sm:$0xff] (!%p1897_p4)  ;;  %v385_v14 = vld [vmem:[%s3011_s0 + $0x70] sm:$0xff] (!%p1897_p4) }
  0x15   : > { %399 = vst [vmem:[#allocation2 + $0x60] sm:$0xff] %v383_v12  ;;  %400 = vst [vmem:[#allocation2 + $0x68] sm:$0xff] %v384_v13  ;;  %v386_v15 = vld [vmem:[%s3011_s0 + $0x78] sm:$0xff] }
  0x16   : > { %401 = vst [vmem:[#allocation2 + $0x70] sm:$0xff] %v385_v14  ;;  %402 = vst [vmem:[#allocation2 + $0x78] sm:$0xff] %v386_v15 }
  0x17 PF: > { %v2386_v27 = vld [vmem:[%s3012_s1 + $0x40] sm:$0xff]   ;;  %v2387_v43 = vld [vmem:[%s3012_s1 + $0x48] sm:$0xff]   ;;  %v2388_v44 = vld [vmem:[%s3012_s1 + $0x50] sm:$0xff]   ;;  %vm807_vm0 = vcmask 523264   ;;  %p1987_p5 = scmp.ne.s32.totalorder %s2555_s10, 3 }
  0x18   : > { %v403_v16 = vld [vmem:[#allocation2] sm:$0xff]  ;;  %v404_v17 = vld [vmem:[#allocation2 + $0x8] sm:$0xff]  ;;  %2177 = vmatprep.mubr.bf16.mxu1 %v2386_v27  ;;  %v2396_v46 = vld [vmem:[%s3012_s1 + $0x10] sm:$0xff]  }
  0x19   : > { %v405_v18 = vld [vmem:[#allocation2 + $0x10] sm:$0xff]  ;;  %v419_v19 = vpack.c.bf16 %v404_v17, %v403_v16  ;;  %v406_v20 = vld [vmem:[#allocation2 + $0x18] sm:$0xff]  ;;  %v2394_v34 = vld [vmem:[%s3012_s1] sm:$0xff]  }
  0x1a   : > { %v420_v21 = vpack.c.bf16 %v406_v20, %v405_v18  ;;  %v407_v22 = vld [vmem:[#allocation2 + $0x20] sm:$0xff]  ;;  %v408_v23 = vld [vmem:[#allocation2 + $0x28] sm:$0xff]  ;;  %2145 = vmatprep.mubr.bf16.mxu0 %v2394_v34  ;;  %v2404_v48 = vld [vmem:[%s2571_s18 + $0x30] sm:$0xff]  }
  0x1b   : > { %2161 = vmatprep.subr.bf16.mxu1 %v419_v19  ;;  %2129 = vmatprep.subr.bf16.mxu0 %v419_v19  ;;  %v409_v24 = vld [vmem:[#allocation2 + $0x30] sm:$0xff]  ;;  %v421_v25 = vpack.c.bf16 %v408_v23, %v407_v22  ;;  %v410_v26 = vld [vmem:[#allocation2 + $0x38] sm:$0xff]  ;;  %v2402_v42 = vld [vmem:[%s2571_s18 + $0x20] sm:$0xff]  }
  0x1c   : > { %2162 = vmatpush3.bf16.msra.mxu1 %v419_v19  ;;  %2130 = vmatpush3.bf16.msra.mxu0 %v419_v19  ;;  %v422_v28 = vpack.c.bf16 %v410_v26, %v409_v24  ;;  %v411_v29 = vld [vmem:[#allocation2 + $0x40] sm:$0xff]  ;;  %v412_v30 = vld [vmem:[#allocation2 + $0x48] sm:$0xff]  ;;  %v2389_v49 = vld [vmem:[%s3012_s1 + $0x58] sm:$0xff]  }
  0x1d   : > { %2163 = vmatprep.subr.bf16.mxu1 %v420_v21  ;;  %2131 = vmatprep.subr.bf16.mxu0 %v420_v21  ;;  %v413_v31 = vld [vmem:[#allocation2 + $0x50] sm:$0xff]  ;;  %v423_v32 = vpack.c.bf16 %v412_v30, %v411_v29  ;;  %v414_v33 = vld [vmem:[#allocation2 + $0x58] sm:$0xff]  ;;  %v2395_v45 = vld [vmem:[%s3012_s1 + $0x8] sm:$0xff]  }
  0x1e   : > { %v424_v35 = vpack.c.bf16 %v414_v33, %v413_v31  ;;  %v415_v36 = vld [vmem:[#allocation2 + $0x60] sm:$0xff]  ;;  %v416_v37 = vld [vmem:[#allocation2 + $0x68] sm:$0xff]  ;;  %v417_v39 = vld [vmem:[#allocation2 + $0x70] sm:$0xff] }
  0x1f   : > { %v425_v38 = vpack.c.bf16 %v416_v37, %v415_v36  ;;  %v418_v40 = vld [vmem:[#allocation2 + $0x78] sm:$0xff]  ;;  %v2403_v47 = vld [vmem:[%s2571_s18 + $0x28] sm:$0xff]   ;;  %v2390_v50 = vld [vmem:[%s3012_s1 + $0x60] sm:$0xff]  }
  0x20   : > { %2164 = vmatpush3.bf16.msra.mxu1 %v420_v21  ;;  %2132 = vmatpush3.bf16.msra.mxu0 %v420_v21  ;;  %v426_v41 = vpack.c.bf16 %v418_v40, %v417_v39  ;;  %v2397_v51 = vld [vmem:[%s3012_s1 + $0x18] sm:$0xff]   ;;  %v2398_v52 = vld [vmem:[%s3012_s1 + $0x20] sm:$0xff]   ;;  %v2391_v54 = vld [vmem:[%s3012_s1 + $0x68] sm:$0xff]  }
  0x21   : > { %2165 = vmatprep.subr.bf16.mxu1 %v421_v25  ;;  %2133 = vmatprep.subr.bf16.mxu0 %v421_v25  ;;  %v2405_v53 = vld [vmem:[%s2571_s18 + $0x38] sm:$0xff]   ;;  %v2392_v55 = vld [vmem:[%s3012_s1 + $0x70] sm:$0xff]   ;;  %v2399_v56 = vld [vmem:[%s3012_s1 + $0x28] sm:$0xff]  }
  0x22   : > { %v2400_v57 = vld [vmem:[%s3012_s1 + $0x30] sm:$0xff]   ;;  %v2393_v58 = vld [vmem:[%s3012_s1 + $0x78] sm:$0xff]   ;;  %v2406_v60 = vld [vmem:[%s2571_s18] sm:$0xff]  }
  0x23   : > { %v2401_v59 = vld [vmem:[%s3012_s1 + $0x38] sm:$0xff]   ;;  %v2407_v8 = vld [vmem:[%s2571_s18 + $0x8] sm:$0xff]   ;;  %v2408_v12 = vld [vmem:[%s2571_s18 + $0x10] sm:$0xff]  }
  0x24   : > { %2166 = vmatpush3.bf16.msra.mxu1 %v421_v25  ;;  %2134 = vmatpush3.bf16.msra.mxu0 %v421_v25  ;;  %v2409_v22 = vld [vmem:[%s2571_s18 + $0x18] sm:$0xff]  }
  0x25   : > { %2167 = vmatprep.subr.bf16.mxu1 %v422_v28  ;;  %2135 = vmatprep.subr.bf16.mxu0 %v422_v28 }
  0x28   : > { %2168 = vmatpush3.bf16.msra.mxu1 %v422_v28  ;;  %2136 = vmatpush3.bf16.msra.mxu0 %v422_v28 }
  0x29   : > { %2169 = vmatprep.subr.bf16.mxu1 %v423_v32  ;;  %2137 = vmatprep.subr.bf16.mxu0 %v423_v32 }
  0x2c   : > { %2170 = vmatpush3.bf16.msra.mxu1 %v423_v32  ;;  %2138 = vmatpush3.bf16.msra.mxu0 %v423_v32 }
  0x2d   : > { %2171 = vmatprep.subr.bf16.mxu1 %v424_v35  ;;  %2139 = vmatprep.subr.bf16.mxu0 %v424_v35 }
  0x30   : > { %2172 = vmatpush3.bf16.msra.mxu1 %v424_v35  ;;  %2140 = vmatpush3.bf16.msra.mxu0 %v424_v35 }
  0x31   : > { %2173 = vmatprep.subr.bf16.mxu1 %v425_v38  ;;  %2141 = vmatprep.subr.bf16.mxu0 %v425_v38 }
  0x34   : > { %2174 = vmatpush3.bf16.msra.mxu1 %v425_v38  ;;  %2142 = vmatpush3.bf16.msra.mxu0 %v425_v38 }
  0x35   : > { %2175 = vmatprep.subr.bf16.mxu1 %v426_v41  ;;  %2143 = vmatprep.subr.bf16.mxu0 %v426_v41 }
  0x38   : > { %2176 = vmatpush3.bf16.msra.mxu1 %v426_v41  ;;  %2144 = vmatpush3.bf16.msra.mxu0 %v426_v41 }
  0x39   : > { %2193 = vmatprep.subr.bf16.mxu0 %v2402_v42 }
  0x3b   : > { %2178 = vmatmul.mubr.bf16.vlgmr.msra.gmra.mrb[0].mxu1 %v2387_v43  ;;  %2146 = vmatmul.mubr.bf16.vlgmr.msra.gmra.mrb[0].mxu0 %v2395_v45 }
  0x3c   : > { %2181 = vmatprep.mubr.bf16.mxu1 %v2388_v44  ;;  %2149 = vmatprep.mubr.bf16.mxu0 %v2396_v46 }
  0x3d   : > { %2194 = vmatpush3.bf16.msra.mxu0 %v2402_v42 }
  0x3e   : > { %2195 = vmatprep.subr.bf16.mxu0 %v2403_v47 }
  0x41   : > { %2196 = vmatpush3.bf16.msra.mxu0 %v2403_v47 }
  0x42   : > { %2197 = vmatprep.subr.bf16.mxu0 %v2404_v48 }
  0x43   : > { %2182 = vmatmul.mubr.bf16.gmra.mrb[4].mxu1 %v2389_v49  ;;  %2150 = vmatmul.mubr.bf16.gmra.mrb[4].mxu0 %v2397_v51  ;;  %v2411_v49 = vld [vmem:[%s2576_s21 + $0x8] sm:$0xff]   ;;  %v2413_v51 = vld [vmem:[%s2576_s21 + $0x18] sm:$0xff]  }
  0x44   : > { %2185 = vmatprep.mubr.bf16.mxu1 %v2390_v50  ;;  %2153 = vmatprep.mubr.bf16.mxu0 %v2398_v52  ;;  %v2412_v50 = vld [vmem:[%s2576_s21 + $0x10] sm:$0xff]   ;;  %v2414_v52 = vld [vmem:[%s2576_s21 + $0x20] sm:$0xff]  }
  0x45   : > { %2198 = vmatpush3.bf16.msra.mxu0 %v2404_v48  ;;  %v2410_v48 = vld [vmem:[%s2576_s21] sm:$0xff]  }
  0x46   : > { %2199 = vmatprep.subr.bf16.mxu0 %v2405_v53  ;;  %2241 = vmatprep.subr.bf16.mxu1 %v2410_v48 }
  0x47   : > { %2242 = vmatpush3.bf16.msra.mxu1 %v2410_v48 }
  0x48   : > { %2243 = vmatprep.subr.bf16.mxu1 %v2411_v49 }
  0x49   : > { %2200 = vmatpush3.bf16.msra.mxu0 %v2405_v53  ;;  %v2415_v53 = vld [vmem:[%s2576_s21 + $0x28] sm:$0xff]  }
  0x4a   : > { %2217 = vmatprep.subr.bf16.mxu0 %v2406_v60 }
  0x4b   : > { %2186 = vmatmul.mubr.bf16.gmra.mrb[8].mxu1 %v2391_v54  ;;  %2154 = vmatmul.mubr.bf16.gmra.mrb[8].mxu0 %v2399_v56  ;;  %v2416_v54 = vld [vmem:[%s2576_s21 + $0x30] sm:$0xff]  }
  0x4c   : > { %2189 = vmatprep.mubr.bf16.mxu1 %v2392_v55  ;;  %2157 = vmatprep.mubr.bf16.mxu0 %v2400_v57  ;;  %v2417_v55 = vld [vmem:[%s2576_s21 + $0x38] sm:$0xff]  }
  0x4d   : > { %2244 = vmatpush3.bf16.msra.mxu1 %v2411_v49 }
  0x4e   : > { %2245 = vmatprep.subr.bf16.mxu1 %v2412_v50 }
  0x51   : > { %2246 = vmatpush3.bf16.msra.mxu1 %v2412_v50 }
  0x52   : > { %2247 = vmatprep.subr.bf16.mxu1 %v2413_v51 }
  0x53   : > { %2190 = vmatmul.mubr.bf16.gmra.mrb[12].mxu1 %v2393_v58  ;;  %2158 = vmatmul.mubr.bf16.gmra.mrb[12].mxu0 %v2401_v59 }
  0x55   : > { %2248 = vmatpush3.bf16.msra.mxu1 %v2413_v51 }
  0x56   : > { %2249 = vmatprep.subr.bf16.mxu1 %v2414_v52 }
  0x59   : > { %2250 = vmatpush3.bf16.msra.mxu1 %v2414_v52 }
  0x5a   : > { %2251 = vmatprep.subr.bf16.mxu1 %v2415_v53 }
  0x5d   : > { %2252 = vmatpush3.bf16.msra.mxu1 %v2415_v53 }
  0x5e   : > { %2253 = vmatprep.subr.bf16.mxu1 %v2416_v54 }
  0x61   : > { %2254 = vmatpush3.bf16.msra.mxu1 %v2416_v54 }
  0x62   : > { %2255 = vmatprep.subr.bf16.mxu1 %v2417_v55 }
  0x65   : > { %2256 = vmatpush3.bf16.msra.mxu1 %v2417_v55 }
 0x10e   : > { %v2179_v61 = vpop.f32.mrb[0].mxu1  ;;  %v2684_v63 = vpop.f32.mrb[0].mxu0 }
 0x10f   : > { %v703_v62 = vpop.f32.mrb[1].mxu1  ;;  %v2686_v1 = vpop.f32.mrb[1].mxu0 }
 0x110   : > { %v2180_v0 = vpop.f32.mrb[2].mxu1  ;;  %v2148_v4 = vpop.f32.mrb[2].mxu0 }
 0x111   : > { %v767_v2 = vpack.c.bf16 %v2180_v0, %v2179_v61  ;;  %v706_v3 = vpop.f32.mrb[3].mxu1  ;;  %v589_v6 = vpack.c.bf16 %v2148_v4, %v2684_v63  ;;  %v528_v7 = vpop.f32.mrb[3].mxu0 }
 0x112   : > { %v766_v5 = vpack.c.bf16 %v706_v3, %v703_v62  ;;  %v588_v9 = vpack.c.bf16 %v528_v7, %v2686_v1 }
 0x114   : > { %2201 = vmatprep.mubr.msk.bf16.mxu0 %vm807_vm0, %v766_v5 }
 0x115   : > { %2202 = vmatmul.mubr.msk.bf16.vlgmr.msra.gmra.mrb[16].mxu0 %vm807_vm0, %v767_v2 }
 0x116   : > { %2218 = vmatpush3.bf16.msra.mxu0 %v2406_v60  ;;  %v2183_v10 = vpop.f32.mrb[4].mxu1  ;;  %v2151_v13 = vpop.f32.mrb[4].mxu0 }
 0x117   : > { %v719_v11 = vpop.f32.mrb[5].mxu1  ;;  %2219 = vmatprep.subr.bf16.mxu0 %v2407_v8  ;;  %v541_v15 = vpop.f32.mrb[5].mxu0 }
 0x118   : > { %v2184_v14 = vpop.f32.mrb[6].mxu1  ;;  %v2152_v18 = vpop.f32.mrb[6].mxu0 }
 0x119   : > { %v769_v16 = vpack.c.bf16 %v2184_v14, %v2183_v10  ;;  %v722_v17 = vpop.f32.mrb[7].mxu1  ;;  %v591_v20 = vpack.c.bf16 %v2152_v18, %v2151_v13  ;;  %v544_v21 = vpop.f32.mrb[7].mxu0 }
 0x11a   : > { %v768_v19 = vpack.c.bf16 %v722_v17, %v719_v11  ;;  %2220 = vmatpush3.bf16.msra.mxu0 %v2407_v8  ;;  %v590_v23 = vpack.c.bf16 %v544_v21, %v541_v15 }
 0x11b   : > { %2221 = vmatprep.subr.bf16.mxu0 %v2408_v12 }
 0x11c   : > { %2205 = vmatprep.mubr.msk.bf16.mxu0 %vm807_vm0, %v768_v19 }
 0x11d   : > { %2206 = vmatmul.mubr.msk.bf16.gmra.mrb[20].mxu0 %vm807_vm0, %v769_v16 }
 0x11e   : > { %v2187_v24 = vpop.f32.mrb[8].mxu1  ;;  %2222 = vmatpush3.bf16.msra.mxu0 %v2408_v12  ;;  %v2155_v26 = vpop.f32.mrb[8].mxu0 }
 0x11f   : > { %v735_v25 = vpop.f32.mrb[9].mxu1  ;;  %2223 = vmatprep.subr.bf16.mxu0 %v2409_v22  ;;  %v557_v28 = vpop.f32.mrb[9].mxu0 }
 0x120   : > { %v2188_v27 = vpop.f32.mrb[10].mxu1  ;;  %v2156_v31 = vpop.f32.mrb[10].mxu0 }
 0x121   : > { %v771_v29 = vpack.c.bf16 %v2188_v27, %v2187_v24  ;;  %v738_v30 = vpop.f32.mrb[11].mxu1  ;;  %v593_v33 = vpack.c.bf16 %v2156_v31, %v2155_v26  ;;  %v560_v34 = vpop.f32.mrb[11].mxu0 }
 0x122   : > { %v770_v32 = vpack.c.bf16 %v738_v30, %v735_v25  ;;  %2224 = vmatpush3.bf16.msra.mxu0 %v2409_v22  ;;  %v592_v35 = vpack.c.bf16 %v560_v34, %v557_v28 }
 0x124   : > { %2209 = vmatprep.mubr.msk.bf16.mxu0 %vm807_vm0, %v770_v32 }
 0x125   : > { %2210 = vmatmul.mubr.msk.bf16.gmra.mrb[24].mxu0 %vm807_vm0, %v771_v29 }
 0x126   : > { %v2191_v36 = vpop.f32.mrb[12].mxu1  ;;  %v2159_v38 = vpop.f32.mrb[12].mxu0 }
 0x127   : > { %v751_v37 = vpop.f32.mrb[13].mxu1  ;;  %v573_v40 = vpop.f32.mrb[13].mxu0 }
 0x128   : > { %v2192_v39 = vpop.f32.mrb[14].mxu1  ;;  %v2160_v43 = vpop.f32.mrb[14].mxu0 }
 0x129   : > { %v773_v41 = vpack.c.bf16 %v2192_v39, %v2191_v36  ;;  %v754_v42 = vpop.f32.mrb[15].mxu1  ;;  %v595_v45 = vpack.c.bf16 %v2160_v43, %v2159_v38  ;;  %v576_v46 = vpop.f32.mrb[15].mxu0 }
 0x12a   : > { %v772_v44 = vpack.c.bf16 %v754_v42, %v751_v37  ;;  %v594_v47 = vpack.c.bf16 %v576_v46, %v573_v40 }
 0x12c   : > { %2213 = vmatprep.mubr.msk.bf16.mxu0 %vm807_vm0, %v772_v44 }
 0x12d   : > { %2214 = vmatmul.mubr.msk.bf16.gmra.mrb[28].mxu0 %vm807_vm0, %v773_v41 }
 0x12e   : > { %2225 = vmatprep.mubr.msk.bf16.mxu0 %vm807_vm0, %v588_v9 }
 0x135   : > { %2226 = vmatmul.mubr.msk.bf16.vlgmr.msra.gmra.mrb[16].mxu0 %vm807_vm0, %v589_v6 }
 0x136   : > { %2229 = vmatprep.mubr.msk.bf16.mxu0 %vm807_vm0, %v590_v23 }
 0x13d   : > { %2230 = vmatmul.mubr.msk.bf16.gmra.mrb[20].mxu0 %vm807_vm0, %v591_v20 }
 0x13e   : > { %2233 = vmatprep.mubr.msk.bf16.mxu0 %vm807_vm0, %v592_v35 }
 0x145   : > { %2234 = vmatmul.mubr.msk.bf16.gmra.mrb[24].mxu0 %vm807_vm0, %v593_v33 }
 0x146   : > { %2237 = vmatprep.mubr.msk.bf16.mxu0 %vm807_vm0, %v594_v47 }
 0x14d   : > { %2238 = vmatmul.mubr.msk.bf16.gmra.mrb[28].mxu0 %vm807_vm0, %v595_v45 }
 0x208   : > { %v2717_v56 = vpop.f32.mrb[16].mxu0 }
 0x209   : > { %v1964_v57 = vmul.f32 -1.442695, %v2717_v56  ;;  %v2720_v58 = vpop.f32.mrb[17].mxu0 }
 0x20a   : > { %v1962_v59 = vmul.f32 -1.442695, %v2720_v58  ;;  %v2723_v60 = vpop.f32.mrb[18].mxu0 }
 0x20b   : > { %2418 = vpow2.f32 %v1964_v57  ;;  %v1965_v61 = vmul.f32 -1.442695, %v2723_v60  ;;  %v2726_v62 = vpop.f32.mrb[19].mxu0 }
 0x20c   : > { %2420 = vpow2.f32 %v1962_v59  ;;  %v1963_v63 = vmul.f32 -1.442695, %v2726_v62 }
 0x20d   : > { %2422 = vpow2.f32 %v1965_v61 }
 0x20e   : > { %2424 = vpow2.f32 %v1963_v63 }
 0x210   : > { %v2729_v0 = vpop.f32.mrb[20].mxu0 }
 0x211   : > { %v1968_v1 = vmul.f32 -1.442695, %v2729_v0  ;;  %v2732_v2 = vpop.f32.mrb[21].mxu0 }
 0x212   : > { %v1966_v3 = vmul.f32 -1.442695, %v2732_v2  ;;  %v2735_v4 = vpop.f32.mrb[22].mxu0 }
 0x213   : > { %2426 = vpow2.f32 %v1968_v1  ;;  %v1969_v5 = vmul.f32 -1.442695, %v2735_v4  ;;  %v2738_v6 = vpop.f32.mrb[23].mxu0 }
 0x214   : > { %2428 = vpow2.f32 %v1966_v3  ;;  %v1967_v7 = vmul.f32 -1.442695, %v2738_v6 }
 0x215   : > { %v2419_v8 = vpop.eup %2418  ;;  %2430 = vpow2.f32 %v1969_v5 }
 0x216   : > { %v2421_v9 = vpop.eup %2420  ;;  %v1124_v10 = vadd.f32 1.0, %v2419_v8  ;;  %2432 = vpow2.f32 %v1967_v7 }
 0x217   : > { %v2423_v11 = vpop.eup %2422  ;;  %v1122_v12 = vadd.f32 1.0, %v2421_v9 }
 0x218   : > { %v2425_v13 = vpop.eup %2424  ;;  %2434 = vrcp.f32 %v1124_v10  ;;  %v1125_v14 = vadd.f32 1.0, %v2423_v11  ;;  %v2741_v15 = vpop.f32.mrb[24].mxu0 }
 0x219   : > { %2436 = vrcp.f32 %v1122_v12  ;;  %v1123_v16 = vadd.f32 1.0, %v2425_v13  ;;  %v1972_v17 = vmul.f32 -1.442695, %v2741_v15  ;;  %v2744_v18 = vpop.f32.mrb[25].mxu0 }
 0x21a   : > { %2438 = vrcp.f32 %v1125_v14  ;;  %v1970_v19 = vmul.f32 -1.442695, %v2744_v18  ;;  %v2747_v20 = vpop.f32.mrb[26].mxu0 }
 0x21b   : > { %2440 = vrcp.f32 %v1123_v16  ;;  %v1973_v21 = vmul.f32 -1.442695, %v2747_v20  ;;  %v2750_v22 = vpop.f32.mrb[27].mxu0 }
 0x21c   : > { %2442 = vpow2.f32 %v1972_v17  ;;  %v1971_v23 = vmul.f32 -1.442695, %v2750_v22 }
 0x21d   : > { %v2427_v24 = vpop.eup %2426  ;;  %2444 = vpow2.f32 %v1970_v19 }
 0x21e   : > { %v2429_v25 = vpop.eup %2428  ;;  %v1128_v26 = vadd.f32 1.0, %v2427_v24  ;;  %2446 = vpow2.f32 %v1973_v21 }
 0x21f   : > { %v2431_v27 = vpop.eup %2430  ;;  %v1126_v28 = vadd.f32 1.0, %v2429_v25  ;;  %2448 = vpow2.f32 %v1971_v23 }
 0x220   : > { %v2433_v29 = vpop.eup %2432  ;;  %2450 = vrcp.f32 %v1128_v26  ;;  %v1129_v30 = vadd.f32 1.0, %v2431_v27  ;;  %v2753_v31 = vpop.f32.mrb[28].mxu0 }
 0x221   : > { %2452 = vrcp.f32 %v1126_v28  ;;  %v1127_v32 = vadd.f32 1.0, %v2433_v29  ;;  %v1976_v33 = vmul.f32 -1.442695, %v2753_v31  ;;  %v2756_v34 = vpop.f32.mrb[29].mxu0  ;;  %v1374_v28 = vlaneseq  ;;  %v1339_v29 = vld [vmem:[%s362_s15] sm:$0x1] }
 0x222   : > { %v2435_v35 = vpop.eup %2434  ;;  %2454 = vrcp.f32 %v1129_v30  ;;  %v1974_v36 = vmul.f32 -1.442695, %v2756_v34  ;;  %v2759_v37 = vpop.f32.mrb[30].mxu0  ;;  %vm1340_vm1 = vcmp.gt.f32.partialorder %v1339_v29, 0.5 }
 0x223   : > { %v2437_v38 = vpop.eup %2436  ;;  %2456 = vrcp.f32 %v1127_v32  ;;  %v1977_v39 = vmul.f32 -1.442695, %v2759_v37  ;;  %v2762_v40 = vpop.f32.mrb[31].mxu0  ;;  %v1375_v30 = vshrl.u32 %v1374_v28, 7 }
 0x224   : > { %v2439_v41 = vpop.eup %2438  ;;  %2458 = vpow2.f32 %v1976_v33  ;;  %v1975_v42 = vmul.f32 -1.442695, %v2762_v40  ;;  %v2498_v33 = vmov 0  }
 0x225   : > { %v2441_v43 = vpop.eup %2440  ;;  %2460 = vpow2.f32 %v1974_v36  ;;  %v1171_v44 = vpack.c.bf16 %v2439_v41, %v2435_v35  ;;  %v1376_v32 = vsub.s32 0, %v1375_v30  ;;  %v1373_v35 = vsel %vm1340_vm1, 1, %v2498_v33 }
 0x226   : > { %v2443_v45 = vpop.eup %2442  ;;  %2462 = vpow2.f32 %v1977_v39  ;;  %v1170_v46 = vpack.c.bf16 %v2441_v43, %v2437_v38  ;;  %v1343_v39 = vmax.f32 %v2717_v56, 0.0 }
 0x227   : > { %v2445_v47 = vpop.eup %2444  ;;  %v1132_v48 = vadd.f32 1.0, %v2443_v45  ;;  %2464 = vpow2.f32 %v1975_v42  ;;  %v2770_v36 = vrot.slane %v1373_v35, %v1376_v32  ;;  %v2780_v42 = vld [vmem:[%s365_s24] ss:$0 sm:$0xff]  ;;  %v1350_v32 = vmax.f32 %v2750_v22, 0.0 }
 0x228   : > { %v2447_v49 = vpop.eup %2446  ;;  %v1130_v50 = vadd.f32 1.0, %v2445_v47  ;;  %2257 = vmatprep.mubr.bf16.mxu1 %v1170_v46  ;;  %v1344_v47 = vmax.f32 %v2723_v60, 0.0 }
 0x229   : > { %v2449_v51 = vpop.eup %2448  ;;  %2466 = vrcp.f32 %v1132_v48  ;;  %v1133_v52 = vadd.f32 1.0, %v2447_v49  ;;  %2258 = vmatmul.mubr.bf16.vlgmr.msra.gmra.mrb[16].mxu1 %v1171_v44  ;;  %vm1378_vm2 = vcmp.eq.s32.totalorder %v2770_v36, 1  ;;  %v1341_v44 = vmax.f32 %v2720_v58, 0.0 }
 0x22a   : > { %v2451_v53 = vpop.eup %2450  ;;  %2468 = vrcp.f32 %v1130_v50  ;;  %v1131_v54 = vadd.f32 1.0, %v2449_v51  ;;  %v1342_v50 = vmax.f32 %v2726_v62, 0.0 }
 0x22b   : > { %v2453_v55 = vpop.eup %2452  ;;  %2470 = vrcp.f32 %v1133_v52 }
 0x22c   : > { %v2455_v57 = vpop.eup %2454  ;;  %2472 = vrcp.f32 %v1131_v54 }
 0x22d   : > { %v2457_v59 = vpop.eup %2456  ;;  %v1173_v61 = vpack.c.bf16 %v2455_v57, %v2451_v53 }
 0x22e   : > { %v2459_v63 = vpop.eup %2458  ;;  %v1172_v1 = vpack.c.bf16 %v2457_v59, %v2453_v55  ;;  %v1347_v59 = vmax.f32 %v2729_v0, 0.0 }
 0x22f   : > { %v2461_v3 = vpop.eup %2460  ;;  %v1136_v5 = vadd.f32 1.0, %v2459_v63 }
 0x230   : > { %v2463_v7 = vpop.eup %2462  ;;  %v1134_v8 = vadd.f32 1.0, %v2461_v3  ;;  %2261 = vmatprep.mubr.bf16.mxu1 %v1172_v1  ;;  %v1345_v1 = vmax.f32 %v2732_v2, 0.0 }
 0x231   : > { %v2465_v9 = vpop.eup %2464  ;;  %2474 = vrcp.f32 %v1136_v5  ;;  %v1137_v10 = vadd.f32 1.0, %v2463_v7  ;;  %2262 = vmatmul.mubr.bf16.gmra.mrb[20].mxu1 %v1173_v61  ;;  %v1348_v7 = vmax.f32 %v2735_v4, 0.0 }
 0x232   : > { %2476 = vrcp.f32 %v1134_v8  ;;  %v1135_v11 = vadd.f32 1.0, %v2465_v9 }
 0x233   : > { %v2467_v12 = vpop.eup %2466  ;;  %2478 = vrcp.f32 %v1137_v10 }
 0x234   : > { %v2469_v13 = vpop.eup %2468  ;;  %2480 = vrcp.f32 %v1135_v11  ;;  %v1346_v11 = vmax.f32 %v2738_v6, 0.0 }
 0x235   : > { %v2471_v14 = vpop.eup %2470 }
 0x236   : > { %v2473_v16 = vpop.eup %2472  ;;  %v1175_v17 = vpack.c.bf16 %v2471_v14, %v2467_v12 }
 0x237   : > { %v1174_v19 = vpack.c.bf16 %v2473_v16, %v2469_v13 }
 0x239   : > { %2265 = vmatprep.mubr.bf16.mxu1 %v1174_v19  ;;  %v1351_v19 = vmax.f32 %v2741_v15, 0.0 }
 0x23a   : > { %2266 = vmatmul.mubr.bf16.gmra.mrb[24].mxu1 %v1175_v17 }
 0x23b   : > { %v2475_v21 = vpop.eup %2474 }
 0x23c   : > { %v2477_v23 = vpop.eup %2476 }
 0x23d   : > { %v2479_v24 = vpop.eup %2478 }
 0x23e   : > { %v2481_v25 = vpop.eup %2480  ;;  %v1177_v26 = vpack.c.bf16 %v2479_v24, %v2475_v21  ;;  %v1349_v24 = vmax.f32 %v2744_v18, 0.0 }
 0x23f   : > { %v1176_v27 = vpack.c.bf16 %v2481_v25, %v2477_v23 }
 0x241   : > { %2269 = vmatprep.mubr.bf16.mxu1 %v1176_v27  ;;  %v1352_v27 = vmax.f32 %v2747_v20, 0.0 }
 0x242   : > { %2270 = vmatmul.mubr.bf16.gmra.mrb[28].mxu1 %v1177_v26 }
 0x2fc   : > { %v2259_v38 = vpop.f32.mrb[16].mxu1 }
 0x2fd   : > { %v1359_v41 = vmul.f32 %v2259_v38, %v2717_v56  ;;  %v1276_v43 = vpop.f32.mrb[17].mxu1 }
 0x2fe   : > { %v1357_v45 = vmul.f32 %v1276_v43, %v2720_v58  ;;  %v2260_v46 = vpop.f32.mrb[18].mxu1 }
 0x2ff   : > { %v1381_v48 = vsel %vm1378_vm2, %v1343_v39, %v1359_v41  ;;  %v1360_v49 = vmul.f32 %v2260_v46, %v2723_v60  ;;  %v1279_v56 = vpop.f32.mrb[19].mxu1  ;;  %v1353_v46 = vmax.f32 %v2756_v34, 0.0 }
 0x300   : > { %v2790_v51 = vmul.f32 %v2780_v42, %v1381_v48  ;;  %v1379_v52 = vsel %vm1378_vm2, %v1341_v44, %v1357_v45  ;;  %v1358_v53 = vmul.f32 %v1279_v56, %v2726_v62  ;;  %v1355_v44 = vmax.f32 %v2753_v31, 0.0 }
 0x301   : > { %v2796_v58 = vmul.f32 %v2780_v42, %v1379_v52  ;;  %v1382_v54 = vsel %vm1378_vm2, %v1344_v47, %v1360_v49  ;;  %v1356_v49 = vmax.f32 %v2759_v37, 0.0 }
 0x302   : > { %1420 = vst [vmem:[#allocation2 + $0x10] sm:$0xff] %v2790_v51  ;;  %v2802_v60 = vmul.f32 %v2780_v42, %v1382_v54  ;;  %v1380_v55 = vsel %vm1378_vm2, %v1342_v50, %v1358_v53  ;;  %v1354_v53 = vmax.f32 %v2762_v40, 0.0 }
 0x303   : > { %1418 = vst [vmem:[#allocation2] sm:$0xff] %v2796_v58  ;;  %v2808_v57 = vmul.f32 %v2780_v42, %v1380_v55 }
 0x304   : > { %1421 = vst [vmem:[#allocation2 + $0x18] sm:$0xff] %v2802_v60  ;;  %v2263_v62 = vpop.f32.mrb[20].mxu1 }
 0x305   : > { %1419 = vst [vmem:[#allocation2 + $0x8] sm:$0xff] %v2808_v57  ;;  %v1363_v61 = vmul.f32 %v2263_v62, %v2729_v0  ;;  %v1292_v63 = vpop.f32.mrb[21].mxu1 }
 0x306   : > { %v1361_v3 = vmul.f32 %v1292_v63, %v2732_v2  ;;  %v2264_v5 = vpop.f32.mrb[22].mxu1  ;;  %v1455_v63 = vpack.c.bf16 (!%p1987_p5), %v2802_v60, %v2790_v51  ;;  %v1608_v51 = vld [vmem:[%s3018_s7 + $0x8] sm:$0xff] (!%p1987_p5)  ;;  %v1609_v60 = vld [vmem:[%s3018_s7 + $0x10] sm:$0xff] (!%p1987_p5) }
 0x307   : > { %v1385_v8 = vsel %vm1378_vm2, %v1347_v59, %v1363_v61  ;;  %v1364_v9 = vmul.f32 %v2264_v5, %v2735_v4  ;;  %v1295_v10 = vpop.f32.mrb[23].mxu1 }
 0x308   : > { %v2822_v12 = vmul.f32 %v2780_v42, %v1385_v8  ;;  %v1383_v0 = vsel %vm1378_vm2, %v1345_v1, %v1361_v3  ;;  %v1362_v13 = vmul.f32 %v1295_v10, %v2738_v6  ;;  %v2482_v1 = vld [vmem:[%s3017_s6] sm:$0xff] (!%p1987_p5)   ;;  %v1610_v3 = vld [vmem:[%s3018_s7 + $0x18] sm:$0xff] (!%p1987_p5)  ;;  %v1612_v8 = vld [vmem:[%s3018_s7 + $0x28] sm:$0xff] (!%p1987_p5) }
 0x309   : > { %v2828_v2 = vmul.f32 %v2780_v42, %v1383_v0  ;;  %v1386_v14 = vsel %vm1378_vm2, %v1348_v7, %v1364_v9  ;;  %2289 = vmatprep.mubr.bf16.mxu0 (!%p1987_p5), %v2482_v1  ;;  %v2349_v5 = vpack.c.bf16 (!%p1987_p5), %v1610_v3, %v1609_v60  ;;  %v1611_v7 = vld [vmem:[%s3018_s7 + $0x20] sm:$0xff] (!%p1987_p5) }
 0x30a   : > { %1424 = vst [vmem:[#allocation2 + $0x30] sm:$0xff] %v2822_v12  ;;  %v2834_v4 = vmul.f32 %v2780_v42, %v1386_v14  ;;  %v1384_v16 = vsel %vm1378_vm2, %v1346_v11, %v1362_v13  ;;  %v2353_v10 = vpack.c.bf16 (!%p1987_p5), %v1612_v8, %v1611_v7  ;;  %v2483_v13 = vld [vmem:[%s3017_s6 + $0x8] sm:$0xff] (!%p1987_p5)   ;;  %v2485_v14 = vld [vmem:[%s3017_s6 + $0x18] sm:$0xff] (!%p1987_p5)  }
 0x30b   : > { %1422 = vst [vmem:[#allocation2 + $0x20] sm:$0xff] %v2828_v2  ;;  %v1407_v17 = vmul.f32 %v2780_v42, %v1384_v16  ;;  %v2487_v16 = vld [vmem:[%s3017_s6 + $0x28] sm:$0xff] (!%p1987_p5)  }
 0x30c   : > { %1425 = vst [vmem:[#allocation2 + $0x38] sm:$0xff] %v2834_v4 }
 0x30d   : > { %1423 = vst [vmem:[#allocation2 + $0x28] sm:$0xff] %v1407_v17  ;;  %v2267_v6 = vpop.f32.mrb[24].mxu1  ;;  %v1456_v36 = vpack.c.bf16 (!%p1987_p5), %v1407_v17, %v2828_v2  ;;  %v2484_v2 = vld [vmem:[%s3017_s6 + $0x10] sm:$0xff] (!%p1987_p5)  }
 0x30e   : > { %v1367_v21 = vmul.f32 %v2267_v6, %v2741_v15  ;;  %v1308_v23 = vpop.f32.mrb[25].mxu1  ;;  %v2488_v17 = vld [vmem:[%s3017_s6 + $0x30] sm:$0xff] (!%p1987_p5)   ;;  %v2489_v6 = vld [vmem:[%s3017_s6 + $0x38] sm:$0xff] (!%p1987_p5)  }
 0x30f   : > { %v1365_v25 = vmul.f32 %v1308_v23, %v2744_v18  ;;  %v2268_v26 = vpop.f32.mrb[26].mxu1 }
 0x310   : > { %v1389_v28 = vsel %vm1378_vm2, %v1351_v19, %v1367_v21  ;;  %v1368_v29 = vmul.f32 %v2268_v26, %v2747_v20  ;;  %v1311_v30 = vpop.f32.mrb[27].mxu1  ;;  %v1613_v19 = vld [vmem:[%s3018_s7 + $0x30] sm:$0xff] (!%p1987_p5)  ;;  %v1614_v21 = vld [vmem:[%s3018_s7 + $0x38] sm:$0xff] (!%p1987_p5) }
 0x311   : > { %v2851_v33 = vmul.f32 %v2780_v42, %v1389_v28  ;;  %v1387_v15 = vsel %vm1378_vm2, %v1349_v24, %v1365_v25  ;;  %v1366_v35 = vmul.f32 %v1311_v30, %v2750_v22  ;;  %v2357_v23 = vpack.c.bf16 (!%p1987_p5), %v1614_v21, %v1613_v19 }
 0x312   : > { %v1410_v18 = vmul.f32 %v2780_v42, %v1387_v15  ;;  %v1390_v38 = vsel %vm1378_vm2, %v1352_v27, %v1368_v29 }
 0x313   : > { %1428 = vst [vmem:[#allocation2 + $0x50] sm:$0xff] %v2851_v33  ;;  %v1413_v20 = vmul.f32 %v2780_v42, %v1390_v38  ;;  %v1388_v39 = vsel %vm1378_vm2, %v1350_v32, %v1366_v35 }
 0x314   : > { %1426 = vst [vmem:[#allocation2 + $0x40] sm:$0xff] %v1410_v18  ;;  %v1411_v41 = vmul.f32 %v2780_v42, %v1388_v39 }
 0x315   : > { %1429 = vst [vmem:[#allocation2 + $0x58] sm:$0xff] %v1413_v20  ;;  %v2271_v43 = vpop.f32.mrb[28].mxu1  ;;  %v1459_v11 = vpack.c.bf16 (!%p1987_p5), %v1413_v20, %v2851_v33 }
 0x316   : > { %1427 = vst [vmem:[#allocation2 + $0x48] sm:$0xff] %v1411_v41  ;;  %v1371_v22 = vmul.f32 %v2271_v43, %v2753_v31  ;;  %v1324_v45 = vpop.f32.mrb[29].mxu1  ;;  %v1458_v9 = vpack.c.bf16 (!%p1987_p5), %v1411_v41, %v1410_v18  ;;  %v1996_v43 = vld [vmem:[%s3019_s8] ss:$0 sm:$0xff] (!%p1987_p5) }
 0x317   : > { %v1369_v47 = vmul.f32 %v1324_v45, %v2756_v34  ;;  %v2272_v48 = vpop.f32.mrb[30].mxu1 }
 0x318   : > { %v1393_v56 = vsel %vm1378_vm2, %v1355_v44, %v1371_v22  ;;  %v1372_v50 = vmul.f32 %v2272_v48, %v2759_v37  ;;  %v1327_v52 = vpop.f32.mrb[31].mxu1  ;;  %1437 = sbr.rel (%p1987_p5) target bundleno = 1286 (0x506), region = 64 }
 0x319   : > { %v1416_v54 = vmul.f32 %v2780_v42, %v1393_v56  ;;  %v1391_v31 = vsel %vm1378_vm2, %v1353_v46, %v1369_v47  ;;  %v1370_v55 = vmul.f32 %v1327_v52, %v2762_v40  ;;  %v1454_v40 = vpack.c.bf16 (!%p1987_p5), %v2808_v57, %v2796_v58  ;;  %v1607_v58 = vld [vmem:[%s3018_s7] sm:$0xff] (!%p1987_p5) }
 0x31a   : > { %v1414_v34 = vmul.f32 %v2780_v42, %v1391_v31  ;;  %v1394_v62 = vsel %vm1378_vm2, %v1356_v49, %v1372_v50  ;;  %v2345_v57 = vpack.c.bf16 (!%p1987_p5), %v1608_v51, %v1607_v58 }
 0x31b   : > { %1432 = vst [vmem:[#allocation2 + $0x70] sm:$0xff] %v1416_v54  ;;  %v1417_v59 = vmul.f32 %v2780_v42, %v1394_v62  ;;  %v1392_v37 = vsel %vm1378_vm2, %v1354_v53, %v1370_v55  ;;  %2273 = vmatprep.subr.bf16.mxu0 (!%p1987_p5), %v1454_v40 }
 0x31c   : > { %1430 = vst [vmem:[#allocation2 + $0x60] sm:$0xff] %v1414_v34  ;;  %v1415_v61 = vmul.f32 %v2780_v42, %v1392_v37  ;;  %2274 = vmatpush3.bf16.msra.mxu0 (!%p1987_p5), %v1454_v40  ;;  %v1457_v42 = vpack.c.bf16 (!%p1987_p5), %v2834_v4, %v2822_v12  ;;  %2346 = vmatprep.subr.bf16.mxu1 (!%p1987_p5), %v2345_v57  ;;  %v2486_v4 = vld [vmem:[%s3017_s6 + $0x20] sm:$0xff] (!%p1987_p5)  }
 0x31d   : > { %1433 = vst [vmem:[#allocation2 + $0x78] sm:$0xff] %v1417_v59  ;;  %2275 = vmatprep.subr.bf16.mxu0 (!%p1987_p5), %v1455_v63  ;;  %2348 = vmatpush3.bf16.msra.mxu1 (!%p1987_p5), %v2345_v57  ;;  %v1461_v0 = vpack.c.bf16 (!%p1987_p5), %v1417_v59, %v1416_v54 }
 0x31e   : > { %1431 = vst [vmem:[#allocation2 + $0x68] sm:$0xff] %v1415_v61  ;;  %2350 = vmatprep.subr.bf16.mxu1 (!%p1987_p5), %v2349_v5  ;;  %v1460_v12 = vpack.c.bf16 (!%p1987_p5), %v1415_v61, %v1414_v34 }
 0x320   : > { %2276 = vmatpush3.bf16.msra.mxu0 %v1455_v63 }
 0x321   : > { %2277 = vmatprep.subr.bf16.mxu0 %v1456_v36  ;;  %2352 = vmatpush3.bf16.msra.mxu1 %v2349_v5 }
 0x322   : > { %2354 = vmatprep.subr.bf16.mxu1 %v2353_v10 }
 0x324   : > { %2278 = vmatpush3.bf16.msra.mxu0 %v1456_v36 }
 0x325   : > { %2279 = vmatprep.subr.bf16.mxu0 %v1457_v42  ;;  %2356 = vmatpush3.bf16.msra.mxu1 %v2353_v10 }
 0x326   : > { %2358 = vmatprep.subr.bf16.mxu1 %v2357_v23 }
 0x328   : > { %2280 = vmatpush3.bf16.msra.mxu0 %v1457_v42 }
 0x329   : > { %2281 = vmatprep.subr.bf16.mxu0 %v1458_v9  ;;  %2360 = vmatpush3.bf16.msra.mxu1 %v2357_v23 }
 0x32c   : > { %2282 = vmatpush3.bf16.msra.mxu0 %v1458_v9 }
 0x32d   : > { %2283 = vmatprep.subr.bf16.mxu0 %v1459_v11 }
 0x330   : > { %2284 = vmatpush3.bf16.msra.mxu0 %v1459_v11 }
 0x331   : > { %2285 = vmatprep.subr.bf16.mxu0 %v1460_v12 }
 0x334   : > { %2286 = vmatpush3.bf16.msra.mxu0 %v1460_v12 }
 0x335   : > { %2287 = vmatprep.subr.bf16.mxu0 %v1461_v0 }
 0x338   : > { %2288 = vmatpush3.bf16.msra.mxu0 %v1461_v0 }
 0x33b   : > { %2290 = vmatmul.mubr.bf16.vlgmr.msra.gmra.mrb[0].mxu0 %v2483_v13 }
 0x33c   : > { %2293 = vmatprep.mubr.bf16.mxu0 %v2484_v2 }
 0x343   : > { %2294 = vmatmul.mubr.bf16.gmra.mrb[4].mxu0 %v2485_v14 }
 0x344   : > { %2297 = vmatprep.mubr.bf16.mxu0 %v2486_v4 }
 0x34b   : > { %2298 = vmatmul.mubr.bf16.gmra.mrb[8].mxu0 %v2487_v16 }
 0x34c   : > { %2301 = vmatprep.mubr.bf16.mxu0 %v2488_v17 }
 0x353   : > { %2302 = vmatmul.mubr.bf16.gmra.mrb[12].mxu0 %v2489_v6 }
 0x40e   : > { %v2291_v24 = vpop.f32.mrb[0].mxu0 }
 0x40f   : > { %v1544_v25 = vpop.f32.mrb[1].mxu0 }
 0x410   : > { %v2292_v26 = vpop.f32.mrb[2].mxu0  ;;  %2321 = vmatprep.mubr.msk.f32.mxu1 %vm807_vm0, %v1544_v25 }
 0x411   : > { %v1547_v27 = vpop.f32.mrb[3].mxu0 }
 0x412   : > { %2322 = vmatmul.mubr.msk.f32.vlgmr.msra.gmra.mrb[0].mxu1 %vm807_vm0, %v1547_v27 }
 0x413   : > { %2324 = vmatprep.mubr.msk.f32.mxu1 %vm807_vm0, %v2291_v24 }
 0x416   : > { %v2295_v28 = vpop.f32.mrb[4].mxu0  ;;  %2325 = vmatmul.mubr.msk.f32.gmra.mrb[2].mxu1 %vm807_vm0, %v2292_v26 }
 0x417   : > { %v1560_v29 = vpop.f32.mrb[5].mxu0 }
 0x418   : > { %v2296_v30 = vpop.f32.mrb[6].mxu0  ;;  %2327 = vmatprep.mubr.msk.f32.mxu1 %vm807_vm0, %v1560_v29 }
 0x419   : > { %v1563_v32 = vpop.f32.mrb[7].mxu0 }
 0x41a   : > { %2328 = vmatmul.mubr.msk.f32.gmra.mrb[4].mxu1 %vm807_vm0, %v1563_v32 }
 0x41b   : > { %2330 = vmatprep.mubr.msk.f32.mxu1 %vm807_vm0, %v2295_v28 }
 0x41e   : > { %v2299_v33 = vpop.f32.mrb[8].mxu0  ;;  %2331 = vmatmul.mubr.msk.f32.gmra.mrb[6].mxu1 %vm807_vm0, %v2296_v30 }
 0x41f   : > { %v1576_v15 = vpop.f32.mrb[9].mxu0 }
 0x420   : > { %v2300_v35 = vpop.f32.mrb[10].mxu0  ;;  %2333 = vmatprep.mubr.msk.f32.mxu1 %vm807_vm0, %v1576_v15 }
 0x421   : > { %v1579_v18 = vpop.f32.mrb[11].mxu0 }
 0x422   : > { %2334 = vmatmul.mubr.msk.f32.gmra.mrb[8].mxu1 %vm807_vm0, %v1579_v18 }
 0x423   : > { %2336 = vmatprep.mubr.msk.f32.mxu1 %vm807_vm0, %v2299_v33 }
 0x426   : > { %v2303_v38 = vpop.f32.mrb[12].mxu0  ;;  %2337 = vmatmul.mubr.msk.f32.gmra.mrb[10].mxu1 %vm807_vm0, %v2300_v35 }
 0x427   : > { %v1592_v20 = vpop.f32.mrb[13].mxu0 }
 0x428   : > { %v2304_v39 = vpop.f32.mrb[14].mxu0  ;;  %2339 = vmatprep.mubr.msk.f32.mxu1 %vm807_vm0, %v1592_v20 }
 0x429   : > { %v1595_v41 = vpop.f32.mrb[15].mxu0 }
 0x42a   : > { %2340 = vmatmul.mubr.msk.f32.gmra.mrb[12].mxu1 %vm807_vm0, %v1595_v41 }
 0x42b   : > { %2342 = vmatprep.mubr.msk.f32.mxu1 %vm807_vm0, %v2303_v38 }
 0x42e   : > { %2343 = vmatmul.mubr.msk.f32.gmra.mrb[14].mxu1 %vm807_vm0, %v2304_v39 }
 0x4e5   : > { %v2323_v44 = vpop.f32.mrb[0].mxu1 }
 0x4e6   : > { %v1742_v22 = vadd.f32 %v2323_v44, %v1996_v43  ;;  %v1736_v45 = vpop.f32.mrb[1].mxu1 }
 0x4e7   : > { %v1737_v46 = vadd.f32 %v1996_v43, %v1736_v45 }
 0x4e8   : > { %1816 = vst [vmem:[%s3020_s9 + $0x8] sm:$0xff] %v1742_v22 }
 0x4e9   : > { %1815 = vst [vmem:[%s3020_s9] sm:$0xff] %v1737_v46  ;;  %v2326_v47 = vpop.f32.mrb[2].mxu1 }
 0x4ea   : > { %v1752_v48 = vadd.f32 %v2326_v47, %v1996_v43  ;;  %v1746_v49 = vpop.f32.mrb[3].mxu1 }
 0x4eb   : > { %v1747_v56 = vadd.f32 %v1996_v43, %v1746_v49 }
 0x4ec   : > { %1818 = vst [vmem:[%s3020_s9 + $0x18] sm:$0xff] %v1752_v48 }
 0x4ed   : > { %1817 = vst [vmem:[%s3020_s9 + $0x10] sm:$0xff] %v1747_v56  ;;  %v2329_v50 = vpop.f32.mrb[4].mxu1 }
 0x4ee   : > { %v1762_v52 = vadd.f32 %v2329_v50, %v1996_v43  ;;  %v1756_v53 = vpop.f32.mrb[5].mxu1 }
 0x4ef   : > { %v1757_v54 = vadd.f32 %v1996_v43, %v1756_v53 }
 0x4f0   : > { %1820 = vst [vmem:[%s3020_s9 + $0x28] sm:$0xff] %v1762_v52 }
 0x4f1   : > { %1819 = vst [vmem:[%s3020_s9 + $0x20] sm:$0xff] %v1757_v54  ;;  %v2332_v31 = vpop.f32.mrb[6].mxu1 }
 0x4f2   : > { %v1772_v55 = vadd.f32 %v2332_v31, %v1996_v43  ;;  %v1766_v34 = vpop.f32.mrb[7].mxu1 }
 0x4f3   : > { %v1767_v62 = vadd.f32 %v1996_v43, %v1766_v34 }
 0x4f4   : > { %1822 = vst [vmem:[%s3020_s9 + $0x38] sm:$0xff] %v1772_v55 }
 0x4f5   : > { %1821 = vst [vmem:[%s3020_s9 + $0x30] sm:$0xff] %v1767_v62  ;;  %v2335_v59 = vpop.f32.mrb[8].mxu1 }
 0x4f6   : > { %v1782_v37 = vadd.f32 %v2335_v59, %v1996_v43  ;;  %v1776_v61 = vpop.f32.mrb[9].mxu1 }
 0x4f7   : > { %v1777_v40 = vadd.f32 %v1996_v43, %v1776_v61 }
 0x4f8   : > { %1824 = vst [vmem:[%s3020_s9 + $0x48] sm:$0xff] %v1782_v37 }
 0x4f9   : > { %1823 = vst [vmem:[%s3020_s9 + $0x40] sm:$0xff] %v1777_v40  ;;  %v2338_v63 = vpop.f32.mrb[10].mxu1 }
 0x4fa   : > { %v1792_v1 = vadd.f32 %v2338_v63, %v1996_v43  ;;  %v1786_v36 = vpop.f32.mrb[11].mxu1 }
 0x4fb   : > { %v1787_v42 = vadd.f32 %v1996_v43, %v1786_v36 }
 0x4fc   : > { %1826 = vst [vmem:[%s3020_s9 + $0x58] sm:$0xff] %v1792_v1 }
 0x4fd   : > { %1825 = vst [vmem:[%s3020_s9 + $0x50] sm:$0xff] %v1787_v42  ;;  %v2341_v58 = vpop.f32.mrb[12].mxu1 }
 0x4fe   : > { %v1802_v51 = vadd.f32 %v2341_v58, %v1996_v43  ;;  %v1796_v60 = vpop.f32.mrb[13].mxu1 }
 0x4ff   : > { %v1797_v57 = vadd.f32 %v1996_v43, %v1796_v60 }
 0x500   : > { %1828 = vst [vmem:[%s3020_s9 + $0x68] sm:$0xff] %v1802_v51 }
 0x501   : > { %1827 = vst [vmem:[%s3020_s9 + $0x60] sm:$0xff] %v1797_v57  ;;  %v2344_v3 = vpop.f32.mrb[14].mxu1 }
 0x502   : > { %v1812_v5 = vadd.f32 %v2344_v3, %v1996_v43  ;;  %v1806_v7 = vpop.f32.mrb[15].mxu1 }
 0x503   : > { %v1807_v8 = vadd.f32 %v1996_v43, %v1806_v7 }
 0x504   : > { %1830 = vst [vmem:[%s3020_s9 + $0x78] sm:$0xff] %v1812_v5 }
 0x505   : > { %1829 = vst [vmem:[%s3020_s9 + $0x70] sm:$0xff] %v1807_v8 }
 0x506 PF: > { %s19_s30 = sadd.s32 1, %s2496_s30  }
 0x507   : > { %p16_p6 = scmp.ge.s32.totalorder %s19_s30, 6  }
 0x509   :  { %18 = sbr.rel (!%p16_p6) target bundleno = 1 (0x1), region = 101 }

</bundles_post_ra>
